<compile_context>
chip_gen: v7x
topology: tpu7x:2x2x1
jax: 0.10.0
libtpu: 0.0.40
codegen_flags: <defaults>
</compile_context>

<pallas_src>
import functools

import jax
import jax.numpy as jnp
from jax.experimental import pallas as pl
from jax.experimental.pallas import tpu as pltpu

LANE = 128


def _round_up(n, m):
    return (n + m - 1) // m * m


def _pad2d(a, rows, cols):
    r, c = a.shape
    if (r, c) == (rows, cols):
        return a
    return jnp.pad(a, ((0, rows - r), (0, cols - c)))


def _vmem_budget_bytes():
    """Generation-aware VMEM budget (~60% of per-core capacity)."""
    cap = None
    try:
        info = pltpu.get_tpu_info()
        cap = getattr(info, "vmem_capacity_bytes", None)
    except Exception:
        cap = None
    if not cap:
        cap = 64 << 20          # conservative default (v7x per-TC VMEM)
    return int(cap * 0.6)       # ~38 MiB on v7x, ~76 MiB on v5e/v6e


# ----------------------------------------------------------------------------
# Fused kernel: pooled_patch_sums @ W_fused + b_fused -> LayerNorm(gamma, beta)
# ----------------------------------------------------------------------------
def image_encoder_kernel(pooled_ref,   # (Bt, Kp) compute dtype (bf16/f32)
                         w_ref,        # (Kp, Dp) compute dtype
                         pvec_ref,     # (3, Dp)  f32: [b_fused; gamma; beta]
                         out_ref,      # (Bt, Dp) out dtype
                         *, inv_d, eps):
    # Folded (patch-embed o mean-pool o projection): a single MXU matmul.
    proj = jnp.dot(pooled_ref[...], w_ref[...],
                   preferred_element_type=jnp.float32)
    proj = proj + pvec_ref[0:1, :]                      # (Bt, Dp); padded cols == 0

    # LayerNorm over the REAL D columns.  Padded columns of proj are exactly
    # zero (zero-padded fused weight/bias), so plain lane-axis sums equal sums
    # over the real columns.  Clamp var >= 0 against f32 cancellation.
    mu = jnp.sum(proj, axis=-1, keepdims=True) * inv_d
    ex2 = jnp.sum(proj * proj, axis=-1, keepdims=True) * inv_d
    var = jnp.maximum(ex2 - mu * mu, 0.0)
    normed = (proj - mu) * jax.lax.rsqrt(var + eps)     # rsqrt -> EUP slot
    # Padded gamma/beta are zero -> padded output columns are exactly 0.
    out_ref[...] = (normed * pvec_ref[1:2, :] + pvec_ref[2:3, :]).astype(out_ref.dtype)


# ----------------------------------------------------------------------------
# One-time parameter preparation (fold + pad + cast; cache across calls)
# ----------------------------------------------------------------------------
def prepare_params(params, *, num_patches, compute_dtype=jnp.bfloat16):
    """Fold base_model patch-embed + projection into one matrix; pad & cast once.

    params:
      w_emb  (Cpp, E)  patch-embed weight (conv weight flattened & transposed)
      b_emb  (1, E)
      w_proj (E, D)    torch Linear weight .T
      b_proj (1, D)
      gamma  (1, D), beta (1, D)   LayerNorm affine
    Returns (w_fused_padded, pvec) to be reused across calls.
    """
    w_emb = params["w_emb"].astype(jnp.float32)
    b_emb = params["b_emb"].astype(jnp.float32)
    w_proj = params["w_proj"].astype(jnp.float32)
    b_proj = params["b_proj"].astype(jnp.float32)
    gamma = params["gamma"].astype(jnp.float32)
    beta = params["beta"].astype(jnp.float32)

    Cpp = w_emb.shape[0]
    D = w_proj.shape[1]
    Kp = _round_up(Cpp, LANE)
    Dp = _round_up(D, LANE)
    # (On v6e/v7x, padding Dp/Kp to 256-multiples can better fill the 256-wide
    #  MXU when D is an odd 128-multiple; typical CLIP dims are already aligned.)

    # Exact affine folding (inference path):
    #   LN_in = (sum_patches / P) @ W_emb @ W_proj + (b_emb @ W_proj + b_proj)
    w_fused = (w_emb @ w_proj) * (1.0 / num_patches)    # (Cpp, D) f32
    b_fused = b_emb @ w_proj + b_proj                   # (1, D)   f32

    w_fused_p = _pad2d(w_fused, Kp, Dp).astype(compute_dtype)
    pvec = jnp.concatenate([_pad2d(b_fused, 1, Dp),
                            _pad2d(gamma, 1, Dp),
                            _pad2d(beta, 1, Dp)], axis=0)   # (3, Dp) f32
    return w_fused_p, pvec


# ----------------------------------------------------------------------------
# Wrapper
# ----------------------------------------------------------------------------
def image_encoder(x, w_fused, pvec, *, patch_size, out_dim,
                  batch_tile=512, out_dtype=jnp.float32):
    """x: (B, C, H, W) float32, NCHW like the PyTorch module.

    w_fused, pvec come from prepare_params (padded / folded / cast once)."""
    B, C, H, W = x.shape
    p = patch_size
    Ph, Pw = H // p, W // p
    Cpp = C * p * p
    Kp, Dp = w_fused.shape
    D = out_dim
    compute_dtype = w_fused.dtype
    isize = jnp.dtype(compute_dtype).itemsize
    osize = jnp.dtype(out_dtype).itemsize

    # Sum-pool patch pixels BEFORE the (folded) linear map; the 1/P scale lives
    # in w_fused, so this is a single strided f32 reduction + cast over x that
    # XLA fuses into one HBM pass over the input.
    pooled = x.reshape(B, C, Ph, p, Pw, p).sum(axis=(2, 4)).reshape(B, Cpp)
    pooled = pooled.astype(compute_dtype)

    # Pad the batch only to a multiple of 8 (sublane) and the feature axis to a
    # lane multiple; no padding to a multiple of the batch tile.
    B8 = _round_up(B, 8)
    if (B8, Kp) != (B, Cpp):
        pooled = jnp.pad(pooled, ((0, B8 - B), (0, Kp - Cpp)))

    # Batch tile: largest multiple of 8 that fits the VMEM budget, capped at
    # batch_tile; never collapse to a single grid step when the batch can be
    # split (keeps both v7x TensorCores busy and the in/out pipeline active).
    budget = _vmem_budget_bytes()
    fixed_bytes = 2 * Kp * Dp * isize + 2 * 8 * Dp * 4       # weight + packed params (dbl-buffered)
    per_row = 2 * Kp * isize + 2 * Dp * osize + 2 * Dp * 4   # in/out tiles + f32 intermediates
    headroom = 4 << 20
    max_bt = max(8, ((budget - fixed_bytes - headroom) // per_row) // 8 * 8)
    Bt = max(8, min(batch_tile, max_bt, B8) // 8 * 8)
    if B8 > 8 and Bt >= B8:
        Bt = max(8, _round_up(B8 // 2, 8))    # guarantee >= 2 grid steps
    grid_b = pl.cdiv(B8, Bt)

    block_bytes = fixed_bytes + Bt * per_row
    vmem_limit = int(min(budget, max(16 << 20, block_bytes + headroom)))

    flops = 2 * B8 * Kp * Dp
    bytes_accessed = int(B8 * Kp * isize + Kp * Dp * isize + 3 * Dp * 4
                         + B8 * Dp * osize)

    kernel = functools.partial(image_encoder_kernel, inv_d=1.0 / D, eps=1e-5)

    # TODO(synk): mark the grid-invariant w_fused/pvec specs single-buffered
    # (pipeline_mode=pl.Buffered(1)) once verified on the deployed jax version;
    # after folding they are small enough that default double-buffering fits.
    out_p = pl.pallas_call(
        kernel,
        out_shape=jax.ShapeDtypeStruct((B8, Dp), out_dtype),
        grid=(grid_b,),
        in_specs=[
            pl.BlockSpec((Bt, Kp), lambda b: (b, 0)),   # pooled patch sums
            pl.BlockSpec((Kp, Dp), lambda b: (0, 0)),   # fused weight (grid-invariant)
            pl.BlockSpec((3, Dp), lambda b: (0, 0)),    # [b_fused; gamma; beta]
        ],
        out_specs=pl.BlockSpec((Bt, Dp), lambda b: (b, 0)),
        compiler_params=pltpu.CompilerParams(
            dimension_semantics=("parallel",),
            vmem_limit_bytes=vmem_limit),
        cost_estimate=pl.CostEstimate(
            flops=flops, transcendentals=B8, bytes_accessed=bytes_accessed),
    )(pooled, w_fused, pvec)

    if (B8, Dp) != (B, D):
        out_p = out_p[:B, :D]
    return out_p


# ----------------------------------------------------------------------------
# Pure-JAX reference (matches the original module semantics)
# ----------------------------------------------------------------------------
def image_encoder_ref(x, params, *, patch_size):
    B, C, H, W = x.shape
    p = patch_size
    Ph, Pw = H // p, W // p
    patches = x.reshape(B, C, Ph, p, Pw, p).transpose(0, 2, 4, 1, 3, 5)
    patches = patches.reshape(B, Ph * Pw, C * p * p)
    emb = patches @ params["w_emb"] + params["b_emb"]     # base_model patch embed
    feats = emb.mean(axis=1)                              # base_model pooled features
    proj = feats @ params["w_proj"] + params["b_proj"]    # self.projection
    mu = proj.mean(-1, keepdims=True)
    var = ((proj - mu) ** 2).mean(-1, keepdims=True)
    return (proj - mu) / jnp.sqrt(var + 1e-5) * params["gamma"] + params["beta"]


if __name__ == "__main__":
    # Small shapes consistent with the module's forward.
    B, C, H, W = 2, 4, 16, 16
    patch_size = 8
    embed_dim = 32          # output dim of the stand-in base_model
    proj_dim = 32           # nn.Linear(embed_dim, proj_dim), nn.LayerNorm(proj_dim)
    Cpp = C * patch_size * patch_size
    num_patches = (H // patch_size) * (W // patch_size)

    key = jax.random.PRNGKey(0)
    kx, k1, k2, k3, k4 = jax.random.split(key, 5)

    x = jax.random.normal(kx, (B, C, H, W), dtype=jnp.float32)

    params = {
        # base_model: patch-embed conv weight (E, C, p, p) flattened + transposed
        "w_emb": (jax.random.normal(k1, (embed_dim, Cpp), jnp.float32) * 0.02).T,
        "b_emb": jnp.zeros((1, embed_dim), jnp.float32),
        # self.projection = nn.Linear(embed_dim, proj_dim): torch weight (D, E) -> W.T
        "w_proj": (jax.random.normal(k2, (proj_dim, embed_dim), jnp.float32) * 0.1).T,
        "b_proj": (jax.random.normal(k3, (1, proj_dim), jnp.float32) * 0.1),
        # self.layer_norm = nn.LayerNorm(proj_dim): weight=1, bias=0 at init
        "gamma": jnp.ones((1, proj_dim), jnp.float32),
        "beta": jnp.zeros((1, proj_dim), jnp.float32),
    }

    ref = image_encoder_ref(x, params, patch_size=patch_size)

    # f32 compute path: tight check vs reference.
    w_f32, pv_f32 = prepare_params(params, num_patches=num_patches,
                                   compute_dtype=jnp.float32)
    enc = jax.jit(functools.partial(image_encoder, patch_size=patch_size,
                                    out_dim=proj_dim))
    out_f32 = jax.block_until_ready(enc(x, w_f32, pv_f32))
    assert out_f32.shape == (B, proj_dim)
    assert jnp.allclose(out_f32, ref, atol=2e-3, rtol=2e-3), "f32 mismatch vs reference"

    # bf16 MXU path (default): looser tolerance for bf16 quantization of the
    # pooled sums and the folded weight.
    w_bf16, pv_bf16 = prepare_params(params, num_patches=num_patches,
                                     compute_dtype=jnp.bfloat16)
    out_bf16 = jax.block_until_ready(enc(x, w_bf16, pv_bf16))
    assert out_bf16.shape == (B, proj_dim)
    assert jnp.allclose(out_bf16, ref, atol=5e-2, rtol=5e-2), "bf16 mismatch vs reference"

    print("KERNEL_OK")
</pallas_src>

<mosaic_0001>
module attributes {stable_mosaic.version = 11 : i64} {
  func.func @image_encoder_kernel(%arg0: i32, %arg1: memref<8x256xf32, #tpu.memory_space<vmem>>, %arg2: memref<256x128xf32, #tpu.memory_space<vmem>>, %arg3: memref<3x128xf32, #tpu.memory_space<vmem>>, %arg4: memref<8x128xf32, #tpu.memory_space<vmem>>) attributes {dimension_semantics = [#tpu.dimension_semantics<parallel>], iteration_bounds = array<i64: 1>, scalar_prefetch = 0 : i64, scratch_operands = 0 : i64, tpu.core_type = #tpu.core_type<tc>, window_params = [{transform_indices = @transform_0, window_bounds = array<i64: 8, 256>}, {pipeline_mode = #tpu.pipeline_mode<synchronous>, transform_indices = @transform_1, window_bounds = array<i64: 256, 128>}, {pipeline_mode = #tpu.pipeline_mode<synchronous>, transform_indices = @transform_2, window_bounds = array<i64: 3, 128>}, {transform_indices = @transform_3, window_bounds = array<i64: 8, 128>}]} {
    %c0 = arith.constant 0 : index
    %c0_0 = arith.constant 0 : index
    %0 = vector.load %arg1[%c0, %c0_0] : memref<8x256xf32, #tpu.memory_space<vmem>>, vector<8x256xf32>
    %c0_1 = arith.constant 0 : index
    %c0_2 = arith.constant 0 : index
    %1 = vector.load %arg2[%c0_1, %c0_2] : memref<256x128xf32, #tpu.memory_space<vmem>>, vector<256x128xf32>
    %cst = arith.constant dense<0.000000e+00> : vector<8x128xf32>
    %2 = tpu.matmul %0, %1, %cst {dimension_numbers = #tpu.dot_dimension_numbers<[1], [0], [0], [1], [0, 0, 1, 1], [], []>} : vector<8x256xf32>, vector<256x128xf32>, vector<8x128xf32> -> vector<8x128xf32>
    %c0_3 = arith.constant 0 : index
    %c0_4 = arith.constant 0 : index
    %3 = vector.load %arg3[%c0_3, %c0_4] : memref<3x128xf32, #tpu.memory_space<vmem>>, vector<1x128xf32>
    %4 = vector.broadcast %3 : vector<1x128xf32> to vector<8x128xf32>
    %5 = arith.addf %2, %4 : vector<8x128xf32>
    %cst_5 = arith.constant dense<0.000000e+00> : vector<8xf32>
    %6 = vector.multi_reduction <add>, %5, %cst_5 [1] : vector<8x128xf32> to vector<8xf32>
    %7 = vector.shape_cast %6 : vector<8xf32> to vector<8x1xf32>
    %cst_6 = arith.constant 3.125000e-02 : f32
    %8 = vector.broadcast %cst_6 : f32 to vector<8x1xf32>
    %9 = arith.mulf %7, %8 : vector<8x1xf32>
    %10 = arith.mulf %5, %5 : vector<8x128xf32>
    %cst_7 = arith.constant dense<0.000000e+00> : vector<8xf32>
    %11 = vector.multi_reduction <add>, %10, %cst_7 [1] : vector<8x128xf32> to vector<8xf32>
    %12 = vector.shape_cast %11 : vector<8xf32> to vector<8x1xf32>
    %cst_8 = arith.constant 3.125000e-02 : f32
    %13 = vector.broadcast %cst_8 : f32 to vector<8x1xf32>
    %14 = arith.mulf %12, %13 : vector<8x1xf32>
    %15 = arith.mulf %9, %9 : vector<8x1xf32>
    %16 = arith.subf %14, %15 : vector<8x1xf32>
    %cst_9 = arith.constant 0.000000e+00 : f32
    %17 = vector.broadcast %cst_9 : f32 to vector<8x1xf32>
    %18 = arith.maximumf %16, %17 : vector<8x1xf32>
    %19 = vector.broadcast %9 : vector<8x1xf32> to vector<8x128xf32>
    %20 = arith.subf %5, %19 : vector<8x128xf32>
    %cst_10 = arith.constant 9.99999974E-6 : f32
    %21 = vector.broadcast %cst_10 : f32 to vector<8x1xf32>
    %22 = arith.addf %18, %21 : vector<8x1xf32>
    %23 = math.rsqrt %22 : vector<8x1xf32>
    %24 = vector.broadcast %23 : vector<8x1xf32> to vector<8x128xf32>
    %25 = arith.mulf %20, %24 : vector<8x128xf32>
    %c1 = arith.constant 1 : index
    %c0_11 = arith.constant 0 : index
    %26 = vector.load %arg3[%c1, %c0_11] : memref<3x128xf32, #tpu.memory_space<vmem>>, vector<1x128xf32>
    %27 = vector.broadcast %26 : vector<1x128xf32> to vector<8x128xf32>
    %28 = arith.mulf %25, %27 : vector<8x128xf32>
    %c2 = arith.constant 2 : index
    %c0_12 = arith.constant 0 : index
    %29 = vector.load %arg3[%c2, %c0_12] : memref<3x128xf32, #tpu.memory_space<vmem>>, vector<1x128xf32>
    %30 = vector.broadcast %29 : vector<1x128xf32> to vector<8x128xf32>
    %31 = arith.addf %28, %30 : vector<8x128xf32>
    %c0_13 = arith.constant 0 : index
    %c0_14 = arith.constant 0 : index
    %32 = vector.load %arg4[%c0_13, %c0_14] : memref<8x128xf32, #tpu.memory_space<vmem>>, vector<8x128xf32>
    tpu.vector_store %arg4[%c0_13, %c0_14], %31 {strides = array<i32>} : memref<8x128xf32, #tpu.memory_space<vmem>>, vector<8x128xf32>,
    return
  }
  func.func @transform_0(%arg0: i32) -> (i32, i32) {
    %c0_i32 = arith.constant 0 : i32
    %c0_i32_0 = arith.constant 0 : i32
    return %arg0, %c0_i32 : i32, i32
  }
  func.func @transform_1(%arg0: i32) -> (i32, i32) {
    %c0_i32 = arith.constant 0 : i32
    %c0_i32_0 = arith.constant 0 : i32
    %c0_i32_1 = arith.constant 0 : i32
    return %c0_i32, %c0_i32_0 : i32, i32
  }
  func.func @transform_2(%arg0: i32) -> (i32, i32) {
    %c0_i32 = arith.constant 0 : i32
    %c0_i32_0 = arith.constant 0 : i32
    %c0_i32_1 = arith.constant 0 : i32
    return %c0_i32, %c0_i32_0 : i32, i32
  }
  func.func @transform_3(%arg0: i32) -> (i32, i32) {
    %c0_i32 = arith.constant 0 : i32
    %c0_i32_0 = arith.constant 0 : i32
    return %arg0, %c0_i32 : i32, i32
  }
}

</mosaic_0001>

<bundles_post_ra>
// kernel: image_encoder.1
= control target key start
LH: loop header
LB: loop body
LE: loop exit
PB: predicated region body
PF: predicated region fallthrough
CT: control target
= control target key end

     0   :  { %s360_s1 = inlined_call_operand.vmem [shape: f32[256,128], index: 1, kind: input, shape index: {}]   ;;  %s361_s0 = inlined_call_operand.vmem [shape: f32[8,256], index: 0, kind: input, shape index: {}]   ;;  %s362_s2 = inlined_call_operand.vmem [shape: f32[3,128], index: 2, kind: input, shape index: {}]   ;;  %s363_s3 = inlined_call_operand.vmem [shape: f32[8,128], index: 3, kind: output, shape index: {}]  }
   0x1   :  { %v32_v0 = vld [vmem:[%s360_s1 + $0x80] sm:$0xff]  ;;  %v33_v1 = vld [vmem:[%s360_s1 + $0x88] sm:$0xff]  ;;  %v34_v5 = vld [vmem:[%s360_s1 + $0x90] sm:$0xff] }
   0x2   :  { %v16_v2 = vld [vmem:[%s360_s1] sm:$0xff]  ;;  %v192_v3 = vpack.c.bf16 %v33_v1, %v32_v0  ;;  %v17_v4 = vld [vmem:[%s360_s1 + $0x8] sm:$0xff]  ;;  %v35_v6 = vld [vmem:[%s360_s1 + $0x98] sm:$0xff] }
   0x3   :  { %v194_v7 = vpack.c.bf16 %v17_v4, %v16_v2  ;;  %v196_v8 = vpack.c.bf16 %v35_v6, %v34_v5  ;;  %v18_v9 = vld [vmem:[%s360_s1 + $0x10] sm:$0xff]  ;;  %v19_v10 = vld [vmem:[%s360_s1 + $0x18] sm:$0xff]  ;;  %v36_v11 = vld [vmem:[%s360_s1 + $0xa0] sm:$0xff] }
   0x4   :  { %193 = vmatprep.subr.bf16.mxu0 %v192_v3  ;;  %v37_v12 = vld [vmem:[%s360_s1 + $0xa8] sm:$0xff]  ;;  %v198_v13 = vpack.c.bf16 %v19_v10, %v18_v9  ;;  %v20_v15 = vld [vmem:[%s360_s1 + $0x20] sm:$0xff]  ;;  %v38_v17 = vld [vmem:[%s360_s1 + $0xb0] sm:$0xff] }
   0x5   :  { %195 = vmatpush3.bf16.msra.mxu0 %v194_v7  ;;  %v200_v14 = vpack.c.bf16 %v37_v12, %v36_v11  ;;  %v21_v16 = vld [vmem:[%s360_s1 + $0x28] sm:$0xff]  ;;  %v39_v18 = vld [vmem:[%s360_s1 + $0xb8] sm:$0xff]  ;;  %v22_v21 = vld [vmem:[%s360_s1 + $0x30] sm:$0xff] }
   0x6   :  { %197 = vmatprep.subr.bf16.mxu0 %v196_v8  ;;  %v202_v19 = vpack.c.bf16 %v21_v16, %v20_v15  ;;  %v204_v20 = vpack.c.bf16 %v39_v18, %v38_v17  ;;  %v23_v22 = vld [vmem:[%s360_s1 + $0x38] sm:$0xff]  ;;  %v40_v23 = vld [vmem:[%s360_s1 + $0xc0] sm:$0xff]  ;;  %v41_v24 = vld [vmem:[%s360_s1 + $0xc8] sm:$0xff] }
   0x7   :  { %v15_v25 = vld [vmem:[%s361_s0 + $0x8] sm:$0xff]  ;;  %v206_v26 = vpack.c.bf16 %v23_v22, %v22_v21  ;;  %v208_v27 = vpack.c.bf16 %v41_v24, %v40_v23  ;;  %v24_v28 = vld [vmem:[%s360_s1 + $0x40] sm:$0xff]  ;;  %v42_v30 = vld [vmem:[%s360_s1 + $0xd0] sm:$0xff] }
   0x8   :  { %117 = vmatprep.mubr.f32.mxu0 %v15_v25  ;;  %v25_v29 = vld [vmem:[%s360_s1 + $0x48] sm:$0xff]  ;;  %v43_v31 = vld [vmem:[%s360_s1 + $0xd8] sm:$0xff]  ;;  %v26_v34 = vld [vmem:[%s360_s1 + $0x50] sm:$0xff] }
   0x9   :  { %199 = vmatpush3.bf16.msra.mxu0 %v198_v13  ;;  %v210_v32 = vpack.c.bf16 %v25_v29, %v24_v28  ;;  %v212_v33 = vpack.c.bf16 %v43_v31, %v42_v30  ;;  %v27_v35 = vld [vmem:[%s360_s1 + $0x58] sm:$0xff]  ;;  %v44_v36 = vld [vmem:[%s360_s1 + $0xe0] sm:$0xff]  ;;  %v45_v37 = vld [vmem:[%s360_s1 + $0xe8] sm:$0xff] }
   0xa   :  { %201 = vmatprep.subr.bf16.mxu0 %v200_v14  ;;  %v214_v38 = vpack.c.bf16 %v27_v35, %v26_v34  ;;  %v216_v39 = vpack.c.bf16 %v45_v37, %v44_v36  ;;  %v28_v40 = vld [vmem:[%s360_s1 + $0x60] sm:$0xff]  ;;  %v29_v41 = vld [vmem:[%s360_s1 + $0x68] sm:$0xff]  ;;  %v46_v42 = vld [vmem:[%s360_s1 + $0xf0] sm:$0xff] }
   0xb   :  { %v47_v43 = vld [vmem:[%s360_s1 + $0xf8] sm:$0xff]  ;;  %v218_v44 = vpack.c.bf16 %v29_v41, %v28_v40  ;;  %v30_v46 = vld [vmem:[%s360_s1 + $0x70] sm:$0xff]  ;;  %v14_v49 = vld [vmem:[%s361_s0] sm:$0xff] }
   0xc   :  { %v220_v45 = vpack.c.bf16 %v47_v43, %v46_v42  ;;  %v31_v47 = vld [vmem:[%s360_s1 + $0x78] sm:$0xff]  ;;  %v154_v51 = vld [vmem:[%s362_s2] ss:$0 sm:$0xff]  ;;  %v155_v2 = vld [vmem:[%s362_s2 + $0x1] ss:$0 sm:$0xff] }
   0xd   :  { %203 = vmatpush3.bf16.msra.mxu0 %v202_v19  ;;  %v222_v48 = vpack.c.bf16 %v31_v47, %v30_v46  ;;  %v156_v4 = vld [vmem:[%s362_s2 + $0x2] ss:$0 sm:$0xff] }
   0xe   :  { %205 = vmatprep.subr.bf16.mxu0 %v204_v20 }
  0x11   :  { %207 = vmatpush3.bf16.msra.mxu0 %v206_v26 }
  0x12   :  { %209 = vmatprep.subr.bf16.mxu0 %v208_v27 }
  0x15   :  { %211 = vmatpush3.bf16.msra.mxu0 %v210_v32 }
  0x16   :  { %213 = vmatprep.subr.bf16.mxu0 %v212_v33 }
  0x19   :  { %215 = vmatpush3.bf16.msra.mxu0 %v214_v38 }
  0x1a   :  { %217 = vmatprep.subr.bf16.mxu0 %v216_v39 }
  0x1d   :  { %219 = vmatpush3.bf16.msra.mxu0 %v218_v44 }
  0x1e   :  { %221 = vmatprep.subr.bf16.mxu0 %v220_v45 }
  0x21   :  { %223 = vmatpush3.bf16.msra.mxu0 %v222_v48 }
  0x24   :  { %118 = vmatmul.mubr.f32.vlgmr.msra.gmra.mrb[0].mxu0 %v14_v49 }
  0xf7   :  { %v189_v50 = vpop.f32.mrb[0].mxu0 }
  0xf8   :  { %v190_v52 = vpop.f32.mrb[1].mxu0 }
  0xf9   :  { %v191_v53 = vadd.f32 %v190_v52, %v189_v50 }
  0xfb   :  { %v120_v54 = vadd.f32 %v191_v53, %v154_v51 }
  0xfd   :  { %123 = vadd.xlane.f32.xlu0 %v120_v54  ;;  %v126_v55 = vmul.f32 %v120_v54, %v120_v54 }
 0x101   :  { %127 = vadd.xlane.f32.xlu0 %v126_v55 }
 0x18a   :  { %v124_v56 = vpop.xlane.xlu0 %123 }
 0x18b   :  { %v125_v57 = vmul.f32 0.03125, %v124_v56 }
 0x18d   :  { %v130_v59 = vmul.f32 %v125_v57, %v125_v57  ;;  %v133_v0 = vsub.f32 %v120_v54, %v125_v57 }
 0x18e   :  { %v128_v58 = vpop.xlane.xlu0 %127 }
 0x18f   :  { %v129_v60 = vmul.f32 0.03125, %v128_v58 }
 0x191   :  { %v131_v61 = vsub.f32 %v129_v60, %v130_v59 }
 0x193   :  { %v132_v62 = vmax.f32 %v131_v61, 0.0 }
 0x195   :  { %v134_v63 = vadd.f32 1e-05, %v132_v62 }
 0x197   :  { %224 = vrsqrt.f32 %v134_v63 }
 0x1a1   :  { %v225_v1 = vpop.eup %224 }
 0x1a2   :  { %v136_v3 = vmul.f32 %v225_v1, %v133_v0 }
 0x1a4   :  { %v142_v5 = vmul.f32 %v155_v2, %v136_v3 }
 0x1a6   :  { %v148_v6 = vadd.f32 %v156_v4, %v142_v5 }
 0x1a8   :  { %149 = vst [vmem:[%s363_s3] sm:$0xff] %v148_v6 }

</bundles_post_ra>
